<compile_context>
chip_gen: v7x
topology: tpu7x:2x2x1
jax: 0.10.0
libtpu: 0.0.40
codegen_flags: <defaults>
</compile_context>

<pallas_src>
import jax
import jax.numpy as jnp
from jax import lax
import numpy as np
from jax.experimental import pallas as pl
from jax.experimental.pallas import tpu as pltpu


def lstm_kernel(x_ref, wihT_ref, whhT_ref, b_ref, wlinT_ref, blin_ref,
                out_ref, a_ref, h_all_ref):
    """Full LSTM + linear head in one invocation (sequential dependence on t)."""
    T = x_ref.shape[0]
    H = whhT_ref.shape[0]          # whhT is (hidden, 4*hidden)

    # ---- hoisted input projection with folded biases: one batched matmul ----
    a_ref[...] = (jnp.dot(x_ref[...], wihT_ref[...],
                          preferred_element_type=jnp.float32)
                  + b_ref[...])                          # (T, 4H)

    whhT = whhT_ref[...]                                 # (H, 4H), resident in vregs

    def step(t, carry):
        h_prev, c_prev = carry                           # (1, H) each
        # single serial MXU op per step
        gates = a_ref[pl.ds(t, 1), :] + jnp.dot(
            h_prev, whhT, preferred_element_type=jnp.float32)   # (1, 4H)
        i_g = jax.nn.sigmoid(gates[:, 0:H])
        f_g = jax.nn.sigmoid(gates[:, H:2 * H])
        g_g = jnp.tanh(gates[:, 2 * H:3 * H])
        o_g = jax.nn.sigmoid(gates[:, 3 * H:4 * H])
        c_t = f_g * c_prev + i_g * g_g
        h_t = o_g * jnp.tanh(c_t)
        h_all_ref[pl.ds(t, 1), :] = h_t                  # VMEM scratch, not output
        return (h_t, c_t)

    h0 = jnp.zeros((1, H), dtype=jnp.float32)
    c0 = jnp.zeros((1, H), dtype=jnp.float32)
    # fixed small trip count -> fully unrolled recurrence
    lax.fori_loop(0, T, step, (h0, c0), unroll=True)

    # ---- batched output projection + single store of the whole block ----
    out_ref[...] = (jnp.dot(h_all_ref[...], wlinT_ref[...],
                            preferred_element_type=jnp.float32)
                    + blin_ref[...])


def lstm_forward(x, W_ih, W_hh, b_ih, b_hh, W_lin, b_lin):
    """x: (T, input_size). Returns flattened predictions (T * output_size,)."""
    T, _ = x.shape
    H = W_hh.shape[1]
    out_size = W_lin.shape[0]

    # Glue: pre-transpose weights / fold biases so the kernel does pure
    # row-major matmuls with no in-kernel transposes or per-step bias adds.
    wihT = W_ih.T                          # (input_size, 4H)
    whhT = W_hh.T                          # (H, 4H)
    b = (b_ih + b_hh).reshape(1, 4 * H)    # (1, 4H)
    wlinT = W_lin.T                        # (H, out)
    blin = b_lin.reshape(1, out_size)      # (1, out)

    vmem_spec = pl.BlockSpec(memory_space=pltpu.VMEM)

    out = pl.pallas_call(
        lstm_kernel,
        out_shape=jax.ShapeDtypeStruct((T, out_size), jnp.float32),
        in_specs=[vmem_spec] * 6,
        out_specs=vmem_spec,
        scratch_shapes=[
            pltpu.VMEM((T, 4 * H), jnp.float32),   # A  = x @ W_ih^T + b
            pltpu.VMEM((T, H), jnp.float32),       # H  = stacked hidden states
        ],
    )(x, wihT, whhT, b, wlinT, blin)

    return out.reshape(-1)


def lstm_reference(x, W_ih, W_hh, b_ih, b_hh, W_lin, b_lin):
    """Pure-JAX reference matching PyTorch nn.LSTM + nn.Linear semantics."""
    T = x.shape[0]
    H = W_hh.shape[1]
    h = jnp.zeros((H,), jnp.float32)
    c = jnp.zeros((H,), jnp.float32)
    outs = []
    for t in range(T):
        gates = W_ih @ x[t] + b_ih + W_hh @ h + b_hh     # (4H,)
        i_g = jax.nn.sigmoid(gates[0:H])
        f_g = jax.nn.sigmoid(gates[H:2 * H])
        g_g = jnp.tanh(gates[2 * H:3 * H])
        o_g = jax.nn.sigmoid(gates[3 * H:4 * H])
        c = f_g * c + i_g * g_g
        h = o_g * jnp.tanh(c)
        outs.append(W_lin @ h + b_lin)
    return jnp.stack(outs).reshape(-1)


if __name__ == "__main__":
    input_size = 16
    hidden_size = 32
    output_size = 8
    T = 8

    key = jax.random.PRNGKey(0)
    ks = jax.random.split(key, 7)

    x = jax.random.normal(ks[0], (T, input_size), dtype=jnp.float32)

    # Deterministic parameter init mirroring nn.LSTM / nn.Linear (uniform ±1/sqrt(H)).
    s = 1.0 / float(np.sqrt(hidden_size))
    W_ih = jax.random.uniform(ks[1], (4 * hidden_size, input_size), jnp.float32, -s, s)
    W_hh = jax.random.uniform(ks[2], (4 * hidden_size, hidden_size), jnp.float32, -s, s)
    b_ih = jax.random.uniform(ks[3], (4 * hidden_size,), jnp.float32, -s, s)
    b_hh = jax.random.uniform(ks[4], (4 * hidden_size,), jnp.float32, -s, s)
    W_lin = jax.random.uniform(ks[5], (output_size, hidden_size), jnp.float32, -s, s)
    b_lin = jax.random.uniform(ks[6], (output_size,), jnp.float32, -s, s)

    out = lstm_forward(x, W_ih, W_hh, b_ih, b_hh, W_lin, b_lin)
    out = jax.block_until_ready(out)

    ref = lstm_reference(x, W_ih, W_hh, b_ih, b_hh, W_lin, b_lin)
    np.testing.assert_allclose(np.asarray(out), np.asarray(ref), rtol=1e-5, atol=1e-5)

    print("KERNEL_OK")
</pallas_src>

<mosaic_0001>
module attributes {stable_mosaic.version = 11 : i64} {
  func.func @lstm_kernel(%arg0: memref<8x16xf32, #tpu.memory_space<vmem>>, %arg1: memref<16x128xf32, #tpu.memory_space<vmem>>, %arg2: memref<32x128xf32, #tpu.memory_space<vmem>>, %arg3: memref<1x128xf32, #tpu.memory_space<vmem>>, %arg4: memref<32x8xf32, #tpu.memory_space<vmem>>, %arg5: memref<1x8xf32, #tpu.memory_space<vmem>>, %arg6: memref<8x8xf32, #tpu.memory_space<vmem>>, %arg7: memref<8x128xf32, #tpu.memory_space<vmem>>, %arg8: memref<8x32xf32, #tpu.memory_space<vmem>>) attributes {dimension_semantics = [], scalar_prefetch = 0 : i64, scratch_operands = 2 : i64, tpu.core_type = #tpu.core_type<tc>} {
    %c0 = arith.constant 0 : index
    %c0_0 = arith.constant 0 : index
    %0 = vector.load %arg0[%c0, %c0_0] : memref<8x16xf32, #tpu.memory_space<vmem>>, vector<8x16xf32>
    %c0_1 = arith.constant 0 : index
    %c0_2 = arith.constant 0 : index
    %1 = vector.load %arg1[%c0_1, %c0_2] : memref<16x128xf32, #tpu.memory_space<vmem>>, vector<16x128xf32>
    %cst = arith.constant dense<0.000000e+00> : vector<8x128xf32>
    %2 = tpu.matmul %0, %1, %cst {dimension_numbers = #tpu.dot_dimension_numbers<[1], [0], [0], [1], [0, 0, 1, 1], [], []>} : vector<8x16xf32>, vector<16x128xf32>, vector<8x128xf32> -> vector<8x128xf32>
    %c0_3 = arith.constant 0 : index
    %c0_4 = arith.constant 0 : index
    %3 = vector.load %arg3[%c0_3, %c0_4] : memref<1x128xf32, #tpu.memory_space<vmem>>, vector<1x128xf32>
    %4 = vector.broadcast %3 : vector<1x128xf32> to vector<8x128xf32>
    %5 = arith.addf %2, %4 : vector<8x128xf32>
    %c0_5 = arith.constant 0 : index
    %c0_6 = arith.constant 0 : index
    %6 = vector.load %arg7[%c0_5, %c0_6] : memref<8x128xf32, #tpu.memory_space<vmem>>, vector<8x128xf32>
    tpu.vector_store %arg7[%c0_5, %c0_6], %5 {strides = array<i32>} : memref<8x128xf32, #tpu.memory_space<vmem>>, vector<8x128xf32>,
    %c0_7 = arith.constant 0 : index
    %c0_8 = arith.constant 0 : index
    %7 = vector.load %arg2[%c0_7, %c0_8] : memref<32x128xf32, #tpu.memory_space<vmem>>, vector<32x128xf32>
    %cst_9 = arith.constant 0.000000e+00 : f32
    %8 = vector.broadcast %cst_9 : f32 to vector<1x32xf32>
    %cst_10 = arith.constant 0.000000e+00 : f32
    %9 = vector.broadcast %cst_10 : f32 to vector<1x32xf32>
    %c0_i32 = arith.constant 0 : i32
    %10 = arith.index_cast %c0_i32 : i32 to index
    %c0_11 = arith.constant 0 : index
    %11 = vector.load %arg7[%10, %c0_11] : memref<8x128xf32, #tpu.memory_space<vmem>>, vector<1x128xf32>
    %cst_12 = arith.constant dense<0.000000e+00> : vector<1x128xf32>
    %12 = tpu.matmul %8, %7, %cst_12 {dimension_numbers = #tpu.dot_dimension_numbers<[1], [0], [0], [1], [0, 0, 1, 1], [], []>} : vector<1x32xf32>, vector<32x128xf32>, vector<1x128xf32> -> vector<1x128xf32>
    %13 = arith.addf %11, %12 : vector<1x128xf32>
    %14 = vector.extract_strided_slice %13 {offsets = [0, 0], sizes = [1, 32], strides = [1, 1]} : vector<1x128xf32> to vector<1x32xf32>
    %15 = arith.negf %14 : vector<1x32xf32>
    %16 = math.exp %15 : vector<1x32xf32>
    %cst_13 = arith.constant 1.000000e+00 : f32
    %17 = vector.broadcast %cst_13 : f32 to vector<1x32xf32>
    %18 = arith.addf %17, %16 : vector<1x32xf32>
    %19 = arith.divf %17, %18 : vector<1x32xf32>
    %20 = vector.extract_strided_slice %13 {offsets = [0, 32], sizes = [1, 32], strides = [1, 1]} : vector<1x128xf32> to vector<1x32xf32>
    %21 = arith.negf %20 : vector<1x32xf32>
    %22 = math.exp %21 : vector<1x32xf32>
    %cst_14 = arith.constant 1.000000e+00 : f32
    %23 = vector.broadcast %cst_14 : f32 to vector<1x32xf32>
    %24 = arith.addf %23, %22 : vector<1x32xf32>
    %25 = arith.divf %23, %24 : vector<1x32xf32>
    %26 = vector.extract_strided_slice %13 {offsets = [0, 64], sizes = [1, 32], strides = [1, 1]} : vector<1x128xf32> to vector<1x32xf32>
    %27 = math.tanh %26 : vector<1x32xf32>
    %28 = vector.extract_strided_slice %13 {offsets = [0, 96], sizes = [1, 32], strides = [1, 1]} : vector<1x128xf32> to vector<1x32xf32>
    %29 = arith.negf %28 : vector<1x32xf32>
    %30 = math.exp %29 : vector<1x32xf32>
    %cst_15 = arith.constant 1.000000e+00 : f32
    %31 = vector.broadcast %cst_15 : f32 to vector<1x32xf32>
    %32 = arith.addf %31, %30 : vector<1x32xf32>
    %33 = arith.divf %31, %32 : vector<1x32xf32>
    %34 = arith.mulf %25, %9 : vector<1x32xf32>
    %35 = arith.mulf %19, %27 : vector<1x32xf32>
    %36 = arith.addf %34, %35 : vector<1x32xf32>
    %37 = math.tanh %36 : vector<1x32xf32>
    %38 = arith.mulf %33, %37 : vector<1x32xf32>
    %39 = arith.index_cast %c0_i32 : i32 to index
    %c0_16 = arith.constant 0 : index
    %40 = vector.load %arg8[%39, %c0_16] : memref<8x32xf32, #tpu.memory_space<vmem>>, vector<1x32xf32>
    tpu.vector_store %arg8[%39, %c0_16], %38 {strides = array<i32>} : memref<8x32xf32, #tpu.memory_space<vmem>>, vector<1x32xf32>,
    %c1_i32 = arith.constant 1 : i32
    %41 = arith.index_cast %c1_i32 : i32 to index
    %c0_17 = arith.constant 0 : index
    %42 = vector.load %arg7[%41, %c0_17] : memref<8x128xf32, #tpu.memory_space<vmem>>, vector<1x128xf32>
    %cst_18 = arith.constant dense<0.000000e+00> : vector<1x128xf32>
    %43 = tpu.matmul %38, %7, %cst_18 {dimension_numbers = #tpu.dot_dimension_numbers<[1], [0], [0], [1], [0, 0, 1, 1], [], []>} : vector<1x32xf32>, vector<32x128xf32>, vector<1x128xf32> -> vector<1x128xf32>
    %44 = arith.addf %42, %43 : vector<1x128xf32>
    %45 = vector.extract_strided_slice %44 {offsets = [0, 0], sizes = [1, 32], strides = [1, 1]} : vector<1x128xf32> to vector<1x32xf32>
    %46 = arith.negf %45 : vector<1x32xf32>
    %47 = math.exp %46 : vector<1x32xf32>
    %cst_19 = arith.constant 1.000000e+00 : f32
    %48 = vector.broadcast %cst_19 : f32 to vector<1x32xf32>
    %49 = arith.addf %48, %47 : vector<1x32xf32>
    %50 = arith.divf %48, %49 : vector<1x32xf32>
    %51 = vector.extract_strided_slice %44 {offsets = [0, 32], sizes = [1, 32], strides = [1, 1]} : vector<1x128xf32> to vector<1x32xf32>
    %52 = arith.negf %51 : vector<1x32xf32>
    %53 = math.exp %52 : vector<1x32xf32>
    %cst_20 = arith.constant 1.000000e+00 : f32
    %54 = vector.broadcast %cst_20 : f32 to vector<1x32xf32>
    %55 = arith.addf %54, %53 : vector<1x32xf32>
    %56 = arith.divf %54, %55 : vector<1x32xf32>
    %57 = vector.extract_strided_slice %44 {offsets = [0, 64], sizes = [1, 32], strides = [1, 1]} : vector<1x128xf32> to vector<1x32xf32>
    %58 = math.tanh %57 : vector<1x32xf32>
    %59 = vector.extract_strided_slice %44 {offsets = [0, 96], sizes = [1, 32], strides = [1, 1]} : vector<1x128xf32> to vector<1x32xf32>
    %60 = arith.negf %59 : vector<1x32xf32>
    %61 = math.exp %60 : vector<1x32xf32>
    %cst_21 = arith.constant 1.000000e+00 : f32
    %62 = vector.broadcast %cst_21 : f32 to vector<1x32xf32>
    %63 = arith.addf %62, %61 : vector<1x32xf32>
    %64 = arith.divf %62, %63 : vector<1x32xf32>
    %65 = arith.mulf %56, %36 : vector<1x32xf32>
    %66 = arith.mulf %50, %58 : vector<1x32xf32>
    %67 = arith.addf %65, %66 : vector<1x32xf32>
    %68 = math.tanh %67 : vector<1x32xf32>
    %69 = arith.mulf %64, %68 : vector<1x32xf32>
    %70 = arith.index_cast %c1_i32 : i32 to index
    %c0_22 = arith.constant 0 : index
    %71 = vector.load %arg8[%70, %c0_22] : memref<8x32xf32, #tpu.memory_space<vmem>>, vector<1x32xf32>
    tpu.vector_store %arg8[%70, %c0_22], %69 {strides = array<i32>} : memref<8x32xf32, #tpu.memory_space<vmem>>, vector<1x32xf32>,
    %c2_i32 = arith.constant 2 : i32
    %72 = arith.index_cast %c2_i32 : i32 to index
    %c0_23 = arith.constant 0 : index
    %73 = vector.load %arg7[%72, %c0_23] : memref<8x128xf32, #tpu.memory_space<vmem>>, vector<1x128xf32>
    %cst_24 = arith.constant dense<0.000000e+00> : vector<1x128xf32>
    %74 = tpu.matmul %69, %7, %cst_24 {dimension_numbers = #tpu.dot_dimension_numbers<[1], [0], [0], [1], [0, 0, 1, 1], [], []>} : vector<1x32xf32>, vector<32x128xf32>, vector<1x128xf32> -> vector<1x128xf32>
    %75 = arith.addf %73, %74 : vector<1x128xf32>
    %76 = vector.extract_strided_slice %75 {offsets = [0, 0], sizes = [1, 32], strides = [1, 1]} : vector<1x128xf32> to vector<1x32xf32>
    %77 = arith.negf %76 : vector<1x32xf32>
    %78 = math.exp %77 : vector<1x32xf32>
    %cst_25 = arith.constant 1.000000e+00 : f32
    %79 = vector.broadcast %cst_25 : f32 to vector<1x32xf32>
    %80 = arith.addf %79, %78 : vector<1x32xf32>
    %81 = arith.divf %79, %80 : vector<1x32xf32>
    %82 = vector.extract_strided_slice %75 {offsets = [0, 32], sizes = [1, 32], strides = [1, 1]} : vector<1x128xf32> to vector<1x32xf32>
    %83 = arith.negf %82 : vector<1x32xf32>
    %84 = math.exp %83 : vector<1x32xf32>
    %cst_26 = arith.constant 1.000000e+00 : f32
    %85 = vector.broadcast %cst_26 : f32 to vector<1x32xf32>
    %86 = arith.addf %85, %84 : vector<1x32xf32>
    %87 = arith.divf %85, %86 : vector<1x32xf32>
    %88 = vector.extract_strided_slice %75 {offsets = [0, 64], sizes = [1, 32], strides = [1, 1]} : vector<1x128xf32> to vector<1x32xf32>
    %89 = math.tanh %88 : vector<1x32xf32>
    %90 = vector.extract_strided_slice %75 {offsets = [0, 96], sizes = [1, 32], strides = [1, 1]} : vector<1x128xf32> to vector<1x32xf32>
    %91 = arith.negf %90 : vector<1x32xf32>
    %92 = math.exp %91 : vector<1x32xf32>
    %cst_27 = arith.constant 1.000000e+00 : f32
    %93 = vector.broadcast %cst_27 : f32 to vector<1x32xf32>
    %94 = arith.addf %93, %92 : vector<1x32xf32>
    %95 = arith.divf %93, %94 : vector<1x32xf32>
    %96 = arith.mulf %87, %67 : vector<1x32xf32>
    %97 = arith.mulf %81, %89 : vector<1x32xf32>
    %98 = arith.addf %96, %97 : vector<1x32xf32>
    %99 = math.tanh %98 : vector<1x32xf32>
    %100 = arith.mulf %95, %99 : vector<1x32xf32>
    %101 = arith.index_cast %c2_i32 : i32 to index
    %c0_28 = arith.constant 0 : index
    %102 = vector.load %arg8[%101, %c0_28] : memref<8x32xf32, #tpu.memory_space<vmem>>, vector<1x32xf32>
    tpu.vector_store %arg8[%101, %c0_28], %100 {strides = array<i32>} : memref<8x32xf32, #tpu.memory_space<vmem>>, vector<1x32xf32>,
    %c3_i32 = arith.constant 3 : i32
    %103 = arith.index_cast %c3_i32 : i32 to index
    %c0_29 = arith.constant 0 : index
    %104 = vector.load %arg7[%103, %c0_29] : memref<8x128xf32, #tpu.memory_space<vmem>>, vector<1x128xf32>
    %cst_30 = arith.constant dense<0.000000e+00> : vector<1x128xf32>
    %105 = tpu.matmul %100, %7, %cst_30 {dimension_numbers = #tpu.dot_dimension_numbers<[1], [0], [0], [1], [0, 0, 1, 1], [], []>} : vector<1x32xf32>, vector<32x128xf32>, vector<1x128xf32> -> vector<1x128xf32>
    %106 = arith.addf %104, %105 : vector<1x128xf32>
    %107 = vector.extract_strided_slice %106 {offsets = [0, 0], sizes = [1, 32], strides = [1, 1]} : vector<1x128xf32> to vector<1x32xf32>
    %108 = arith.negf %107 : vector<1x32xf32>
    %109 = math.exp %108 : vector<1x32xf32>
    %cst_31 = arith.constant 1.000000e+00 : f32
    %110 = vector.broadcast %cst_31 : f32 to vector<1x32xf32>
    %111 = arith.addf %110, %109 : vector<1x32xf32>
    %112 = arith.divf %110, %111 : vector<1x32xf32>
    %113 = vector.extract_strided_slice %106 {offsets = [0, 32], sizes = [1, 32], strides = [1, 1]} : vector<1x128xf32> to vector<1x32xf32>
    %114 = arith.negf %113 : vector<1x32xf32>
    %115 = math.exp %114 : vector<1x32xf32>
    %cst_32 = arith.constant 1.000000e+00 : f32
    %116 = vector.broadcast %cst_32 : f32 to vector<1x32xf32>
    %117 = arith.addf %116, %115 : vector<1x32xf32>
    %118 = arith.divf %116, %117 : vector<1x32xf32>
    %119 = vector.extract_strided_slice %106 {offsets = [0, 64], sizes = [1, 32], strides = [1, 1]} : vector<1x128xf32> to vector<1x32xf32>
    %120 = math.tanh %119 : vector<1x32xf32>
    %121 = vector.extract_strided_slice %106 {offsets = [0, 96], sizes = [1, 32], strides = [1, 1]} : vector<1x128xf32> to vector<1x32xf32>
    %122 = arith.negf %121 : vector<1x32xf32>
    %123 = math.exp %122 : vector<1x32xf32>
    %cst_33 = arith.constant 1.000000e+00 : f32
    %124 = vector.broadcast %cst_33 : f32 to vector<1x32xf32>
    %125 = arith.addf %124, %123 : vector<1x32xf32>
    %126 = arith.divf %124, %125 : vector<1x32xf32>
    %127 = arith.mulf %118, %98 : vector<1x32xf32>
    %128 = arith.mulf %112, %120 : vector<1x32xf32>
    %129 = arith.addf %127, %128 : vector<1x32xf32>
    %130 = math.tanh %129 : vector<1x32xf32>
    %131 = arith.mulf %126, %130 : vector<1x32xf32>
    %132 = arith.index_cast %c3_i32 : i32 to index
    %c0_34 = arith.constant 0 : index
    %133 = vector.load %arg8[%132, %c0_34] : memref<8x32xf32, #tpu.memory_space<vmem>>, vector<1x32xf32>
    tpu.vector_store %arg8[%132, %c0_34], %131 {strides = array<i32>} : memref<8x32xf32, #tpu.memory_space<vmem>>, vector<1x32xf32>,
    %c4_i32 = arith.constant 4 : i32
    %134 = arith.index_cast %c4_i32 : i32 to index
    %c0_35 = arith.constant 0 : index
    %135 = vector.load %arg7[%134, %c0_35] : memref<8x128xf32, #tpu.memory_space<vmem>>, vector<1x128xf32>
    %cst_36 = arith.constant dense<0.000000e+00> : vector<1x128xf32>
    %136 = tpu.matmul %131, %7, %cst_36 {dimension_numbers = #tpu.dot_dimension_numbers<[1], [0], [0], [1], [0, 0, 1, 1], [], []>} : vector<1x32xf32>, vector<32x128xf32>, vector<1x128xf32> -> vector<1x128xf32>
    %137 = arith.addf %135, %136 : vector<1x128xf32>
    %138 = vector.extract_strided_slice %137 {offsets = [0, 0], sizes = [1, 32], strides = [1, 1]} : vector<1x128xf32> to vector<1x32xf32>
    %139 = arith.negf %138 : vector<1x32xf32>
    %140 = math.exp %139 : vector<1x32xf32>
    %cst_37 = arith.constant 1.000000e+00 : f32
    %141 = vector.broadcast %cst_37 : f32 to vector<1x32xf32>
    %142 = arith.addf %141, %140 : vector<1x32xf32>
    %143 = arith.divf %141, %142 : vector<1x32xf32>
    %144 = vector.extract_strided_slice %137 {offsets = [0, 32], sizes = [1, 32], strides = [1, 1]} : vector<1x128xf32> to vector<1x32xf32>
    %145 = arith.negf %144 : vector<1x32xf32>
    %146 = math.exp %145 : vector<1x32xf32>
    %cst_38 = arith.constant 1.000000e+00 : f32
    %147 = vector.broadcast %cst_38 : f32 to vector<1x32xf32>
    %148 = arith.addf %147, %146 : vector<1x32xf32>
    %149 = arith.divf %147, %148 : vector<1x32xf32>
    %150 = vector.extract_strided_slice %137 {offsets = [0, 64], sizes = [1, 32], strides = [1, 1]} : vector<1x128xf32> to vector<1x32xf32>
    %151 = math.tanh %150 : vector<1x32xf32>
    %152 = vector.extract_strided_slice %137 {offsets = [0, 96], sizes = [1, 32], strides = [1, 1]} : vector<1x128xf32> to vector<1x32xf32>
    %153 = arith.negf %152 : vector<1x32xf32>
    %154 = math.exp %153 : vector<1x32xf32>
    %cst_39 = arith.constant 1.000000e+00 : f32
    %155 = vector.broadcast %cst_39 : f32 to vector<1x32xf32>
    %156 = arith.addf %155, %154 : vector<1x32xf32>
    %157 = arith.divf %155, %156 : vector<1x32xf32>
    %158 = arith.mulf %149, %129 : vector<1x32xf32>
    %159 = arith.mulf %143, %151 : vector<1x32xf32>
    %160 = arith.addf %158, %159 : vector<1x32xf32>
    %161 = math.tanh %160 : vector<1x32xf32>
    %162 = arith.mulf %157, %161 : vector<1x32xf32>
    %163 = arith.index_cast %c4_i32 : i32 to index
    %c0_40 = arith.constant 0 : index
    %164 = vector.load %arg8[%163, %c0_40] : memref<8x32xf32, #tpu.memory_space<vmem>>, vector<1x32xf32>
    tpu.vector_store %arg8[%163, %c0_40], %162 {strides = array<i32>} : memref<8x32xf32, #tpu.memory_space<vmem>>, vector<1x32xf32>,
    %c5_i32 = arith.constant 5 : i32
    %165 = arith.index_cast %c5_i32 : i32 to index
    %c0_41 = arith.constant 0 : index
    %166 = vector.load %arg7[%165, %c0_41] : memref<8x128xf32, #tpu.memory_space<vmem>>, vector<1x128xf32>
    %cst_42 = arith.constant dense<0.000000e+00> : vector<1x128xf32>
    %167 = tpu.matmul %162, %7, %cst_42 {dimension_numbers = #tpu.dot_dimension_numbers<[1], [0], [0], [1], [0, 0, 1, 1], [], []>} : vector<1x32xf32>, vector<32x128xf32>, vector<1x128xf32> -> vector<1x128xf32>
    %168 = arith.addf %166, %167 : vector<1x128xf32>
    %169 = vector.extract_strided_slice %168 {offsets = [0, 0], sizes = [1, 32], strides = [1, 1]} : vector<1x128xf32> to vector<1x32xf32>
    %170 = arith.negf %169 : vector<1x32xf32>
    %171 = math.exp %170 : vector<1x32xf32>
    %cst_43 = arith.constant 1.000000e+00 : f32
    %172 = vector.broadcast %cst_43 : f32 to vector<1x32xf32>
    %173 = arith.addf %172, %171 : vector<1x32xf32>
    %174 = arith.divf %172, %173 : vector<1x32xf32>
    %175 = vector.extract_strided_slice %168 {offsets = [0, 32], sizes = [1, 32], strides = [1, 1]} : vector<1x128xf32> to vector<1x32xf32>
    %176 = arith.negf %175 : vector<1x32xf32>
    %177 = math.exp %176 : vector<1x32xf32>
    %cst_44 = arith.constant 1.000000e+00 : f32
    %178 = vector.broadcast %cst_44 : f32 to vector<1x32xf32>
    %179 = arith.addf %178, %177 : vector<1x32xf32>
    %180 = arith.divf %178, %179 : vector<1x32xf32>
    %181 = vector.extract_strided_slice %168 {offsets = [0, 64], sizes = [1, 32], strides = [1, 1]} : vector<1x128xf32> to vector<1x32xf32>
    %182 = math.tanh %181 : vector<1x32xf32>
    %183 = vector.extract_strided_slice %168 {offsets = [0, 96], sizes = [1, 32], strides = [1, 1]} : vector<1x128xf32> to vector<1x32xf32>
    %184 = arith.negf %183 : vector<1x32xf32>
    %185 = math.exp %184 : vector<1x32xf32>
    %cst_45 = arith.constant 1.000000e+00 : f32
    %186 = vector.broadcast %cst_45 : f32 to vector<1x32xf32>
    %187 = arith.addf %186, %185 : vector<1x32xf32>
    %188 = arith.divf %186, %187 : vector<1x32xf32>
    %189 = arith.mulf %180, %160 : vector<1x32xf32>
    %190 = arith.mulf %174, %182 : vector<1x32xf32>
    %191 = arith.addf %189, %190 : vector<1x32xf32>
    %192 = math.tanh %191 : vector<1x32xf32>
    %193 = arith.mulf %188, %192 : vector<1x32xf32>
    %194 = arith.index_cast %c5_i32 : i32 to index
    %c0_46 = arith.constant 0 : index
    %195 = vector.load %arg8[%194, %c0_46] : memref<8x32xf32, #tpu.memory_space<vmem>>, vector<1x32xf32>
    tpu.vector_store %arg8[%194, %c0_46], %193 {strides = array<i32>} : memref<8x32xf32, #tpu.memory_space<vmem>>, vector<1x32xf32>,
    %c6_i32 = arith.constant 6 : i32
    %196 = arith.index_cast %c6_i32 : i32 to index
    %c0_47 = arith.constant 0 : index
    %197 = vector.load %arg7[%196, %c0_47] : memref<8x128xf32, #tpu.memory_space<vmem>>, vector<1x128xf32>
    %cst_48 = arith.constant dense<0.000000e+00> : vector<1x128xf32>
    %198 = tpu.matmul %193, %7, %cst_48 {dimension_numbers = #tpu.dot_dimension_numbers<[1], [0], [0], [1], [0, 0, 1, 1], [], []>} : vector<1x32xf32>, vector<32x128xf32>, vector<1x128xf32> -> vector<1x128xf32>
    %199 = arith.addf %197, %198 : vector<1x128xf32>
    %200 = vector.extract_strided_slice %199 {offsets = [0, 0], sizes = [1, 32], strides = [1, 1]} : vector<1x128xf32> to vector<1x32xf32>
    %201 = arith.negf %200 : vector<1x32xf32>
    %202 = math.exp %201 : vector<1x32xf32>
    %cst_49 = arith.constant 1.000000e+00 : f32
    %203 = vector.broadcast %cst_49 : f32 to vector<1x32xf32>
    %204 = arith.addf %203, %202 : vector<1x32xf32>
    %205 = arith.divf %203, %204 : vector<1x32xf32>
    %206 = vector.extract_strided_slice %199 {offsets = [0, 32], sizes = [1, 32], strides = [1, 1]} : vector<1x128xf32> to vector<1x32xf32>
    %207 = arith.negf %206 : vector<1x32xf32>
    %208 = math.exp %207 : vector<1x32xf32>
    %cst_50 = arith.constant 1.000000e+00 : f32
    %209 = vector.broadcast %cst_50 : f32 to vector<1x32xf32>
    %210 = arith.addf %209, %208 : vector<1x32xf32>
    %211 = arith.divf %209, %210 : vector<1x32xf32>
    %212 = vector.extract_strided_slice %199 {offsets = [0, 64], sizes = [1, 32], strides = [1, 1]} : vector<1x128xf32> to vector<1x32xf32>
    %213 = math.tanh %212 : vector<1x32xf32>
    %214 = vector.extract_strided_slice %199 {offsets = [0, 96], sizes = [1, 32], strides = [1, 1]} : vector<1x128xf32> to vector<1x32xf32>
    %215 = arith.negf %214 : vector<1x32xf32>
    %216 = math.exp %215 : vector<1x32xf32>
    %cst_51 = arith.constant 1.000000e+00 : f32
    %217 = vector.broadcast %cst_51 : f32 to vector<1x32xf32>
    %218 = arith.addf %217, %216 : vector<1x32xf32>
    %219 = arith.divf %217, %218 : vector<1x32xf32>
    %220 = arith.mulf %211, %191 : vector<1x32xf32>
    %221 = arith.mulf %205, %213 : vector<1x32xf32>
    %222 = arith.addf %220, %221 : vector<1x32xf32>
    %223 = math.tanh %222 : vector<1x32xf32>
    %224 = arith.mulf %219, %223 : vector<1x32xf32>
    %225 = arith.index_cast %c6_i32 : i32 to index
    %c0_52 = arith.constant 0 : index
    %226 = vector.load %arg8[%225, %c0_52] : memref<8x32xf32, #tpu.memory_space<vmem>>, vector<1x32xf32>
    tpu.vector_store %arg8[%225, %c0_52], %224 {strides = array<i32>} : memref<8x32xf32, #tpu.memory_space<vmem>>, vector<1x32xf32>,
    %c7_i32 = arith.constant 7 : i32
    %227 = arith.index_cast %c7_i32 : i32 to index
    %c0_53 = arith.constant 0 : index
    %228 = vector.load %arg7[%227, %c0_53] : memref<8x128xf32, #tpu.memory_space<vmem>>, vector<1x128xf32>
    %cst_54 = arith.constant dense<0.000000e+00> : vector<1x128xf32>
    %229 = tpu.matmul %224, %7, %cst_54 {dimension_numbers = #tpu.dot_dimension_numbers<[1], [0], [0], [1], [0, 0, 1, 1], [], []>} : vector<1x32xf32>, vector<32x128xf32>, vector<1x128xf32> -> vector<1x128xf32>
    %230 = arith.addf %228, %229 : vector<1x128xf32>
    %231 = vector.extract_strided_slice %230 {offsets = [0, 0], sizes = [1, 32], strides = [1, 1]} : vector<1x128xf32> to vector<1x32xf32>
    %232 = arith.negf %231 : vector<1x32xf32>
    %233 = math.exp %232 : vector<1x32xf32>
    %cst_55 = arith.constant 1.000000e+00 : f32
    %234 = vector.broadcast %cst_55 : f32 to vector<1x32xf32>
    %235 = arith.addf %234, %233 : vector<1x32xf32>
    %236 = arith.divf %234, %235 : vector<1x32xf32>
    %237 = vector.extract_strided_slice %230 {offsets = [0, 32], sizes = [1, 32], strides = [1, 1]} : vector<1x128xf32> to vector<1x32xf32>
    %238 = arith.negf %237 : vector<1x32xf32>
    %239 = math.exp %238 : vector<1x32xf32>
    %cst_56 = arith.constant 1.000000e+00 : f32
    %240 = vector.broadcast %cst_56 : f32 to vector<1x32xf32>
    %241 = arith.addf %240, %239 : vector<1x32xf32>
    %242 = arith.divf %240, %241 : vector<1x32xf32>
    %243 = vector.extract_strided_slice %230 {offsets = [0, 64], sizes = [1, 32], strides = [1, 1]} : vector<1x128xf32> to vector<1x32xf32>
    %244 = math.tanh %243 : vector<1x32xf32>
    %245 = vector.extract_strided_slice %230 {offsets = [0, 96], sizes = [1, 32], strides = [1, 1]} : vector<1x128xf32> to vector<1x32xf32>
    %246 = arith.negf %245 : vector<1x32xf32>
    %247 = math.exp %246 : vector<1x32xf32>
    %cst_57 = arith.constant 1.000000e+00 : f32
    %248 = vector.broadcast %cst_57 : f32 to vector<1x32xf32>
    %249 = arith.addf %248, %247 : vector<1x32xf32>
    %250 = arith.divf %248, %249 : vector<1x32xf32>
    %251 = arith.mulf %242, %222 : vector<1x32xf32>
    %252 = arith.mulf %236, %244 : vector<1x32xf32>
    %253 = arith.addf %251, %252 : vector<1x32xf32>
    %254 = math.tanh %253 : vector<1x32xf32>
    %255 = arith.mulf %250, %254 : vector<1x32xf32>
    %256 = arith.index_cast %c7_i32 : i32 to index
    %c0_58 = arith.constant 0 : index
    %257 = vector.load %arg8[%256, %c0_58] : memref<8x32xf32, #tpu.memory_space<vmem>>, vector<1x32xf32>
    tpu.vector_store %arg8[%256, %c0_58], %255 {strides = array<i32>} : memref<8x32xf32, #tpu.memory_space<vmem>>, vector<1x32xf32>,
    %c8_i32 = arith.constant 8 : i32
    %c0_59 = arith.constant 0 : index
    %c0_60 = arith.constant 0 : index
    %258 = vector.load %arg8[%c0_59, %c0_60] : memref<8x32xf32, #tpu.memory_space<vmem>>, vector<8x32xf32>
    %c0_61 = arith.constant 0 : index
    %c0_62 = arith.constant 0 : index
    %259 = vector.load %arg4[%c0_61, %c0_62] : memref<32x8xf32, #tpu.memory_space<vmem>>, vector<32x8xf32>
    %cst_63 = arith.constant dense<0.000000e+00> : vector<8x8xf32>
    %260 = tpu.matmul %258, %259, %cst_63 {dimension_numbers = #tpu.dot_dimension_numbers<[1], [0], [0], [1], [0, 0, 1, 1], [], []>} : vector<8x32xf32>, vector<32x8xf32>, vector<8x8xf32> -> vector<8x8xf32>
    %c0_64 = arith.constant 0 : index
    %c0_65 = arith.constant 0 : index
    %261 = vector.load %arg5[%c0_64, %c0_65] : memref<1x8xf32, #tpu.memory_space<vmem>>, vector<1x8xf32>
    %262 = vector.broadcast %261 : vector<1x8xf32> to vector<8x8xf32>
    %263 = arith.addf %260, %262 : vector<8x8xf32>
    %c0_66 = arith.constant 0 : index
    %c0_67 = arith.constant 0 : index
    %264 = vector.load %arg6[%c0_66, %c0_67] : memref<8x8xf32, #tpu.memory_space<vmem>>, vector<8x8xf32>
    tpu.vector_store %arg6[%c0_66, %c0_67], %263 {strides = array<i32>} : memref<8x8xf32, #tpu.memory_space<vmem>>, vector<8x8xf32>,
    return
  }
}

</mosaic_0001>

<bundles_post_ra>
// kernel: tpu_custom_call.1
= control target key start
LH: loop header
LB: loop body
LE: loop exit
PB: predicated region body
PF: predicated region fallthrough
CT: control target
= control target key end

     0   :  { %11 = vsyncpa [#allocation5], 0  ;;  %s1616_s0 = inlined_call_operand.vmem [shape: f32[8,16], index: 0, kind: input, shape index: {}]   ;;  %s1617_s1 = inlined_call_operand.hbm [shape: f32[16,128], index: 1, kind: input, shape index: {}]   ;;  %s1618_s2 = inlined_call_operand.vmem [shape: f32[32,128], index: 2, kind: input, shape index: {}]   ;;  %s1619_s3 = inlined_call_operand.vmem [shape: f32[1,128], index: 3, kind: input, shape index: {}]   ;;  %s1620_s4 = inlined_call_operand.vmem [shape: f32[32,8], index: 4, kind: input, shape index: {}]   ;;  %s1621_s5 = inlined_call_operand.vmem [shape: f32[1,8], index: 5, kind: input, shape index: {}]   ;;  %s1622_s6 = inlined_call_operand.hbm [shape: f32[8,8], index: 6, kind: output, shape index: {}]  }
   0x1   :  { %12 = vsyncpa [#allocation6], 0  ;;  %s1407_s21 = smov [#allocation4]   ;;  %s1359_s25 = scalar_lea.hbm %s1617_s1, 256 }
   0x2   :  { %s20_s22 = sshll.u32 %s1407_s21, 4  ;;  %p1360_p0 = scmp.ne.s32.totalorder %s1617_s1, %s1359_s25  ;;  %s21_s22 = int_to_ptr.vmem [resolvable:$true] %s20_s22 }
   0x3   :  { %p1363_p1 = scmp.lt.u32.totalorder %s1359_s25, %s1617_s1 }
   0x5   :  { %p1365_p2 = pnand %p1363_p1, %p1360_p0 }
   0x7   :  { %1368 = shalt.err (!%p1365_p2)
}
   0x8   :  { %s1369_s30 = scalar_lea.vmem %s21_s22, 256  ;;  %p1374_p4 = scmp.lt.s32.totalorder %s21_s22, %s21_s22 }
   0x9   :  { %p1370_p3 = scmp.ne.s32.totalorder %s21_s22, %s1369_s30  ;;  %p1375_p5 = scmp.lt.s32.totalorder %s1369_s30, %s1369_s30 }
   0xb   :  { %p1376_p6 = por %p1375_p5, %p1374_p4 }
   0xd   :  { %p1377_p7 = pnand %p1376_p6, %p1370_p3 }
   0xf   :  { %1380 = shalt.err (!%p1377_p7)
}
  0x10   :  { %s1408_s7 = smov 128   ;;  %s1409_s8 = smov 8  }
  0x11   :  { %26 = dma.hbm_to_vmem [thread:$0]  %s1617_s1, 256, %s21_s22, [#allocation5], %s1408_s7, %s1408_s7, %s1409_s8  }
  0x12   :  { %1403 = dma.done.wait [#allocation5], 256  }
  0x13   :  { %1404 = vsyncadd [#allocation5], 4294967040  ;;  %v1410_v0 = vmov 0.0|0.0   ;;  %vm1411_vm0 = vmmov 0   ;;  %v1412_v1 = vmov 0.0   ;;  %v39_v2 = vld [vmem:[#allocation4] sm:$0xff] }
  0x14   :  { %1229 = vmatprep.subr.bf16.mxu0 %v1410_v0  ;;  %1127 = vmatprep.mubr.msk.f32.mxu0 %vm1411_vm0, %v1412_v1  ;;  %v40_v3 = vld [vmem:[#allocation4 + $0x8] sm:$0xff]  ;;  %v123_v5 = vld [vmem:[%s1618_s2] sm:$0xff]  ;;  %v124_v6 = vld [vmem:[%s1618_s2 + $0x8] sm:$0xff]  ;;  %vm48_vm1 = vcmask 130048   ;;  %s1413_s20 = smov 64   ;;  %vm231_vm2 = vcmask 253952  }
  0x15   :  { %1232 = vmatprep.subr.bf16.mxu1 %v1410_v0  ;;  %1138 = vmatprep.mubr.msk.f32.mxu1 %vm1411_vm0, %v1412_v1  ;;  %v1230_v4 = vpack.c.bf16 %v40_v3, %v39_v2  ;;  %v125_v7 = vld [vmem:[%s1618_s2 + $0x10] sm:$0xff]  ;;  %v1478_v8 = vpack.c.bf16 %v124_v6, %v123_v5  ;;  %v126_v9 = vld [vmem:[%s1618_s2 + $0x18] sm:$0xff]  ;;  %v38_v10 = vld [vmem:[%s1616_s0] sm:$0xff]  ;;  %vm128_vm3 = vcmask 261120   ;;  %vm1039_vm4 = vcmask 64512  }
  0x16   :  { %v1487_v11 = vpack.c.bf16 %v126_v9, %v125_v7  ;;  %v1056_v12 = vld [vmem:[%s1619_s3] ss:$0 sm:$0xff]  ;;  %s1414_s3 = smov 32  }
  0x17   :  { %1231 = vmatpush3.bf16.msra.mxu0 %v1230_v4  ;;  %1234 = vmatpush3.bf16.msra.mxu1 %v1478_v8 }
  0x18   :  { %1238 = vmatprep.subr.bf16.mxu0 %v1410_v0  ;;  %1235 = vmatprep.subr.bf16.mxu1 %v1410_v0 }
  0x1a   :  { %1128 = vmatmul.mubr.msk.f32.vlgmr.msra.gmra.mrb[0].mxu0 %vm48_vm1, %v38_v10 }
  0x1b   :  { %1240 = vmatpush3.bf16.msra.mxu0 %v1478_v8  ;;  %1149 = vmatprep.mubr.msk.f32.mxu0 %vm1411_vm0, %v1412_v1 }
  0x1c   :  { %1237 = vmatpush3.bf16.msra.mxu1 %v1487_v11  ;;  %1241 = vmatprep.subr.bf16.mxu0 %v1410_v0 }
  0x1d   :  { %1244 = vmatprep.subr.bf16.mxu1 %v1410_v0 }
  0x1f   :  { %1139 = vmatmul.mubr.f32.vlgmr.msra.gmra.mrb[0].mxu1 %v1412_v1  ;;  %1243 = vmatpush3.bf16.msra.mxu0 %v1487_v11 }
  0x20   :  { %1246 = vmatpush3.bf16.msra.mxu1 %v1478_v8  ;;  %1160 = vmatprep.mubr.msk.f32.mxu1 %vm1411_vm0, %v1412_v1 }
  0x21   :  { %1247 = vmatprep.subr.bf16.mxu1 %v1410_v0  ;;  %1250 = vmatprep.subr.bf16.mxu0 %v1410_v0 }
  0x24   :  { %1249 = vmatpush3.bf16.msra.mxu1 %v1487_v11 }
  0x25   :  { %1256 = vmatprep.subr.bf16.mxu1 %v1410_v0 }
  0xed   :  { %v118_v13 = vpop.f32.mrb[0].mxu0 }
  0xee   :  { %v119_v14 = vadd.f32 %v1056_v12, %v118_v13  ;;  %v1129_v15 = vpop.f32.mrb[1].mxu0 }
  0xf0   :  { %122 = vst [vmem:[#allocation2] sm:$0xff] %v119_v14 }
  0xf2   :  { %v198_v16 = vpop.f32.mrb[0].mxu1 }
  0xf3   :  { %v1140_v17 = vpop.f32.mrb[1].mxu1 }
  0xf7   :  { %v127_v18 = vld [vmem:[#allocation2] sm:$0x1]  ;;  %v233_v34 = vld [vmem:[#allocation2 + $0x1] sm:$0x1]  ;;  %v336_v52 = vld [vmem:[#allocation2 + $0x2] sm:$0x1] }
  0xf8   :  { %v202_v19 = vadd.f32 %v198_v16, %v127_v18  ;;  %v439_v9 = vld [vmem:[#allocation2 + $0x3] sm:$0x1] }
  0xfa   :  { %1295 = vtanh.f32 %v202_v19  ;;  %v1058_v21 = vmul.f32 -1.442695, %v202_v19 }
  0xfc   :  { %1297 = vpow2.f32 %v1058_v21 }
 0x104   :  { %v1296_v20 = vpop.eup %1295 }
 0x105   :  { %212 = vrot.lane.b32.xlu0 %v1296_v20, %s1413_s20 }
 0x106   :  { %v1298_v22 = vpop.eup %1297 }
 0x107   :  { %v206_v23 = vadd.f32 1.0, %v1298_v22 }
 0x109   :  { %1299 = vrcp.f32 %v206_v23 }
 0x113   :  { %v1300_v24 = vpop.eup %1299 }
 0x114   :  { %v210_v27 = vmul.f32 0.0, %v1300_v24 }
 0x177   :  { %v213_v25 = vpop.permute.xlu0 %212 }
 0x178   :  { %v215_v26 = vmul.f32 %v1300_v24, %v213_v25 }
 0x17a   :  { %217 = vrot.lane.b32.xlu0 %v215_v26, %s1414_s3 }
 0x1ec   :  { %v218_v28 = vpop.permute.xlu0 %217 }
 0x1ed   :  { %v220_v29 = vadd.f32 %v218_v28, %v210_v27  ;;  %v542_v28 = vld [vmem:[#allocation2 + $0x4] sm:$0x1] }
 0x1ef   :  { %1301 = vtanh.f32 %v220_v29 }
 0x1f9   :  { %v1302_v30 = vpop.eup %1301 }
 0x1fa   :  { %223 = vrot.lane.b32.xlu1 %v1302_v30, %s1413_s20 }
 0x26c   :  { %v224_v31 = vpop.permute.xlu1 %223 }
 0x26d   :  { %v226_v32 = vmul.f32 %v1300_v24, %v224_v31 }
 0x26f   :  { %228 = vrot.lane.b32.xlu1 %v226_v32, %s1414_s3 }
 0x2e1   :  { %v229_v33 = vpop.permute.xlu1 %228 }
 0x2e2   :  { %232 = vst.msk [vmem:[#allocation3] sm:$0x1] %vm231_vm2, %v229_v33  ;;  %1150 = vmatmul.mubr.msk.f32.vlgmr.msra.gmra.mrb[2].mxu0 %vm128_vm3, %v229_v33 }
 0x2e3   :  { %1252 = vmatpush3.bf16.msra.mxu0 %v1478_v8  ;;  %1171 = vmatprep.mubr.msk.f32.mxu0 %vm1411_vm0, %v1412_v1 }
 0x2e4   :  { %1253 = vmatprep.subr.bf16.mxu0 %v1410_v0 }
 0x2e7   :  { %1255 = vmatpush3.bf16.msra.mxu0 %v1487_v11 }
 0x2e8   :  { %1262 = vmatprep.subr.bf16.mxu0 %v1410_v0 }
 0x3b5   :  { %v302_v35 = vpop.f32.mrb[2].mxu0 }
 0x3b6   :  { %v306_v36 = vadd.f32 %v302_v35, %v233_v34  ;;  %v1151_v37 = vpop.f32.mrb[3].mxu0 }
 0x3b8   :  { %1303 = vtanh.f32 %v306_v36  ;;  %v1060_v39 = vmul.f32 -1.442695, %v306_v36 }
 0x3ba   :  { %1305 = vpow2.f32 %v1060_v39 }
 0x3c2   :  { %v1304_v38 = vpop.eup %1303 }
 0x3c3   :  { %316 = vrot.lane.b32.xlu0 %v1304_v38, %s1413_s20 }
 0x3c4   :  { %v1306_v40 = vpop.eup %1305 }
 0x3c5   :  { %v310_v41 = vadd.f32 1.0, %v1306_v40 }
 0x3c7   :  { %1307 = vrcp.f32 %v310_v41 }
 0x3d1   :  { %v1308_v42 = vpop.eup %1307 }
 0x3d2   :  { %v314_v45 = vmul.f32 %v1308_v42, %v220_v29 }
 0x435   :  { %v317_v43 = vpop.permute.xlu0 %316 }
 0x436   :  { %v319_v44 = vmul.f32 %v1308_v42, %v317_v43 }
 0x438   :  { %321 = vrot.lane.b32.xlu1 %v319_v44, %s1414_s3 }
 0x4aa   :  { %v322_v46 = vpop.permute.xlu1 %321 }
 0x4ab   :  { %v324_v47 = vadd.f32 %v322_v46, %v314_v45  ;;  %v645_v46 = vld [vmem:[#allocation2 + $0x5] sm:$0x1] }
 0x4ad   :  { %1309 = vtanh.f32 %v324_v47 }
 0x4b7   :  { %v1310_v48 = vpop.eup %1309 }
 0x4b8   :  { %327 = vrot.lane.b32.xlu0 %v1310_v48, %s1413_s20 }
 0x52a   :  { %v328_v49 = vpop.permute.xlu0 %327 }
 0x52b   :  { %v330_v50 = vmul.f32 %v1308_v42, %v328_v49 }
 0x52d   :  { %332 = vrot.lane.b32.xlu1 %v330_v50, %s1414_s3 }
 0x59f   :  { %v333_v51 = vpop.permute.xlu1 %332 }
 0x5a0   :  { %335 = vst.msk [vmem:[#allocation3 + $0x1] sm:$0x1] %vm231_vm2, %v333_v51  ;;  %1161 = vmatmul.mubr.msk.f32.vlgmr.msra.gmra.mrb[2].mxu1 %vm128_vm3, %v333_v51 }
 0x5a1   :  { %1258 = vmatpush3.bf16.msra.mxu1 %v1478_v8  ;;  %1182 = vmatprep.mubr.msk.f32.mxu1 %vm1411_vm0, %v1412_v1 }
 0x5a2   :  { %1259 = vmatprep.subr.bf16.mxu1 %v1410_v0 }
 0x5a5   :  { %1261 = vmatpush3.bf16.msra.mxu1 %v1487_v11 }
 0x5a6   :  { %1268 = vmatprep.subr.bf16.mxu1 %v1410_v0 }
 0x673   :  { %v405_v53 = vpop.f32.mrb[2].mxu1 }
 0x674   :  { %v409_v54 = vadd.f32 %v405_v53, %v336_v52  ;;  %v1162_v55 = vpop.f32.mrb[3].mxu1 }
 0x676   :  { %1311 = vtanh.f32 %v409_v54  ;;  %v1062_v57 = vmul.f32 -1.442695, %v409_v54 }
 0x678   :  { %1313 = vpow2.f32 %v1062_v57 }
 0x680   :  { %v1312_v56 = vpop.eup %1311 }
 0x681   :  { %419 = vrot.lane.b32.xlu0 %v1312_v56, %s1413_s20 }
 0x682   :  { %v1314_v58 = vpop.eup %1313 }
 0x683   :  { %v413_v59 = vadd.f32 1.0, %v1314_v58 }
 0x685   :  { %1315 = vrcp.f32 %v413_v59 }
 0x68f   :  { %v1316_v60 = vpop.eup %1315 }
 0x690   :  { %v417_v63 = vmul.f32 %v1316_v60, %v324_v47 }
 0x6f3   :  { %v420_v61 = vpop.permute.xlu0 %419 }
 0x6f4   :  { %v422_v62 = vmul.f32 %v1316_v60, %v420_v61 }
 0x6f6   :  { %424 = vrot.lane.b32.xlu1 %v422_v62, %s1414_s3  ;;  %v748_v62 = vld [vmem:[#allocation2 + $0x6] sm:$0x1] }
 0x768   :  { %v425_v2 = vpop.permute.xlu1 %424 }
 0x769   :  { %v427_v3 = vadd.f32 %v425_v2, %v417_v63 }
 0x76b   :  { %1317 = vtanh.f32 %v427_v3 }
 0x775   :  { %v1318_v4 = vpop.eup %1317 }
 0x776   :  { %430 = vrot.lane.b32.xlu0 %v1318_v4, %s1413_s20 }
 0x7e8   :  { %v431_v5 = vpop.permute.xlu0 %430 }
 0x7e9   :  { %v433_v6 = vmul.f32 %v1316_v60, %v431_v5 }
 0x7eb   :  { %435 = vrot.lane.b32.xlu1 %v433_v6, %s1414_s3 }
 0x85d   :  { %v436_v7 = vpop.permute.xlu1 %435 }
 0x85e   :  { %438 = vst.msk [vmem:[#allocation3 + $0x2] sm:$0x1] %vm231_vm2, %v436_v7  ;;  %1172 = vmatmul.mubr.msk.f32.vlgmr.msra.gmra.mrb[4].mxu0 %vm128_vm3, %v436_v7 }
 0x85f   :  { %1264 = vmatpush3.bf16.msra.mxu0 %v1478_v8  ;;  %1193 = vmatprep.mubr.msk.f32.mxu0 %vm1411_vm0, %v1412_v1 }
 0x860   :  { %1265 = vmatprep.subr.bf16.mxu0 %v1410_v0 }
 0x863   :  { %1267 = vmatpush3.bf16.msra.mxu0 %v1487_v11 }
 0x864   :  { %1274 = vmatprep.subr.bf16.mxu0 %v1410_v0 }
 0x931   :  { %v508_v10 = vpop.f32.mrb[4].mxu0 }
 0x932   :  { %v512_v12 = vadd.f32 %v508_v10, %v439_v9  ;;  %v1173_v13 = vpop.f32.mrb[5].mxu0 }
 0x934   :  { %1319 = vtanh.f32 %v512_v12  ;;  %v1064_v15 = vmul.f32 -1.442695, %v512_v12 }
 0x936   :  { %1321 = vpow2.f32 %v1064_v15 }
 0x93e   :  { %v1320_v14 = vpop.eup %1319 }
 0x93f   :  { %522 = vrot.lane.b32.xlu0 %v1320_v14, %s1413_s20 }
 0x940   :  { %v1322_v16 = vpop.eup %1321 }
 0x941   :  { %v516_v17 = vadd.f32 1.0, %v1322_v16 }
 0x943   :  { %1323 = vrcp.f32 %v516_v17 }
 0x94d   :  { %v1324_v18 = vpop.eup %1323 }
 0x94e   :  { %v520_v21 = vmul.f32 %v1324_v18, %v427_v3 }
 0x9b1   :  { %v523_v19 = vpop.permute.xlu0 %522 }
 0x9b2   :  { %v525_v20 = vmul.f32 %v1324_v18, %v523_v19  ;;  %v851_v19 = vld [vmem:[#allocation2 + $0x7] sm:$0x1] }
 0x9b4   :  { %527 = vrot.lane.b32.xlu1 %v525_v20, %s1414_s3 }
 0xa26   :  { %v528_v22 = vpop.permute.xlu1 %527 }
 0xa27   :  { %v530_v23 = vadd.f32 %v528_v22, %v520_v21 }
 0xa29   :  { %1325 = vtanh.f32 %v530_v23 }
 0xa33   :  { %v1326_v24 = vpop.eup %1325 }
 0xa34   :  { %533 = vrot.lane.b32.xlu0 %v1326_v24, %s1413_s20 }
 0xaa6   :  { %v534_v25 = vpop.permute.xlu0 %533 }
 0xaa7   :  { %v536_v26 = vmul.f32 %v1324_v18, %v534_v25 }
 0xaa9   :  { %538 = vrot.lane.b32.xlu1 %v536_v26, %s1414_s3 }
 0xb1b   :  { %v539_v27 = vpop.permute.xlu1 %538 }
 0xb1c   :  { %541 = vst.msk [vmem:[#allocation3 + $0x3] sm:$0x1] %vm231_vm2, %v539_v27  ;;  %1183 = vmatmul.mubr.msk.f32.vlgmr.msra.gmra.mrb[4].mxu1 %vm128_vm3, %v539_v27 }
 0xb1d   :  { %1270 = vmatpush3.bf16.msra.mxu1 %v1478_v8  ;;  %1204 = vmatprep.mubr.msk.f32.mxu1 %vm1411_vm0, %v1412_v1 }
 0xb1e   :  { %1271 = vmatprep.subr.bf16.mxu1 %v1410_v0 }
 0xb21   :  { %1273 = vmatpush3.bf16.msra.mxu1 %v1487_v11 }
 0xb22   :  { %1280 = vmatprep.subr.bf16.mxu1 %v1410_v0 }
 0xbef   :  { %v611_v29 = vpop.f32.mrb[4].mxu1 }
 0xbf0   :  { %v615_v30 = vadd.f32 %v611_v29, %v542_v28  ;;  %v1184_v31 = vpop.f32.mrb[5].mxu1 }
 0xbf2   :  { %1327 = vtanh.f32 %v615_v30  ;;  %v1066_v33 = vmul.f32 -1.442695, %v615_v30 }
 0xbf4   :  { %1329 = vpow2.f32 %v1066_v33 }
 0xbfc   :  { %v1328_v32 = vpop.eup %1327 }
 0xbfd   :  { %625 = vrot.lane.b32.xlu0 %v1328_v32, %s1413_s20 }
 0xbfe   :  { %v1330_v34 = vpop.eup %1329 }
 0xbff   :  { %v619_v35 = vadd.f32 1.0, %v1330_v34  ;;  %v955_v34 = vld [vmem:[%s1620_s4] sm:$0xff] }
 0xc01   :  { %1331 = vrcp.f32 %v619_v35  ;;  %v956_v35 = vld [vmem:[%s1620_s4 + $0x8] sm:$0xff] }
 0xc0b   :  { %v1332_v36 = vpop.eup %1331 }
 0xc0c   :  { %v623_v39 = vmul.f32 %v1332_v36, %v530_v23 }
 0xc6f   :  { %v626_v37 = vpop.permute.xlu0 %625 }
 0xc70   :  { %v628_v38 = vmul.f32 %v1332_v36, %v626_v37  ;;  %v1281_v37 = vpack.c.bf16 %v956_v35, %v955_v34 }
 0xc72   :  { %630 = vrot.lane.b32.xlu1 %v628_v38, %s1414_s3  ;;  %v958_v38 = vld [vmem:[%s1620_s4 + $0x18] sm:$0xff] }
 0xce4   :  { %v631_v40 = vpop.permute.xlu1 %630 }
 0xce5   :  { %v633_v41 = vadd.f32 %v631_v40, %v623_v39 }
 0xce7   :  { %1333 = vtanh.f32 %v633_v41 }
 0xcf1   :  { %v1334_v42 = vpop.eup %1333 }
 0xcf2   :  { %636 = vrot.lane.b32.xlu0 %v1334_v42, %s1413_s20 }
 0xd64   :  { %v637_v43 = vpop.permute.xlu0 %636 }
 0xd65   :  { %v639_v44 = vmul.f32 %v1332_v36, %v637_v43  ;;  %v957_v36 = vld [vmem:[%s1620_s4 + $0x10] sm:$0xff]  ;;  %s1415_s4 = smov [#allocation7]  }
 0xd66   :  { %v1284_v39 = vpack.c.bf16 %v958_v38, %v957_v36  ;;  %s1047_s7 = sshll.u32 %s1415_s4, 4  ;;  %s1048_s7 = int_to_ptr.vmem [resolvable:$true] %s1047_s7 }
 0xd67   :  { %641 = vrot.lane.b32.xlu1 %v639_v44, %s1414_s3  ;;  %v1073_v44 = vld [vmem:[%s1621_s5] ss:$0 sm:$0xff]  ;;  %s1381_s8 = scalar_lea.vmem %s1048_s7, 128  ;;  %p1386_p9 = scmp.lt.s32.totalorder %s1048_s7, %s1048_s7 }
 0xd68   :  { %p1382_p8 = scmp.ne.s32.totalorder %s1048_s7, %s1381_s8  ;;  %p1387_p10 = scmp.lt.s32.totalorder %s1381_s8, %s1381_s8 }
 0xd6a   :  { %p1388_p11 = por %p1387_p10, %p1386_p9 }
 0xd6c   :  { %p1389_p12 = pnand %p1388_p11, %p1382_p8 }
 0xdd9   :  { %v642_v45 = vpop.permute.xlu1 %641 }
 0xdda   :  { %644 = vst.msk [vmem:[#allocation3 + $0x4] sm:$0x1] %vm231_vm2, %v642_v45  ;;  %1194 = vmatmul.mubr.msk.f32.vlgmr.msra.gmra.mrb[6].mxu0 %vm128_vm3, %v642_v45 }
 0xddb   :  { %1276 = vmatpush3.bf16.msra.mxu0 %v1478_v8  ;;  %1215 = vmatprep.mubr.msk.f32.mxu0 %vm1411_vm0, %v1412_v1 }
 0xddc   :  { %1277 = vmatprep.subr.bf16.mxu0 %v1410_v0 }
 0xddf   :  { %1279 = vmatpush3.bf16.msra.mxu0 %v1487_v11 }
 0xead   :  { %v714_v47 = vpop.f32.mrb[6].mxu0 }
 0xeae   :  { %v718_v48 = vadd.f32 %v714_v47, %v645_v46  ;;  %v1195_v49 = vpop.f32.mrb[7].mxu0 }
 0xeb0   :  { %1335 = vtanh.f32 %v718_v48  ;;  %v1068_v51 = vmul.f32 -1.442695, %v718_v48 }
 0xeb2   :  { %1337 = vpow2.f32 %v1068_v51 }
 0xeba   :  { %v1336_v50 = vpop.eup %1335 }
 0xebb   :  { %728 = vrot.lane.b32.xlu0 %v1336_v50, %s1413_s20 }
 0xebc   :  { %v1338_v52 = vpop.eup %1337 }
 0xebd   :  { %v722_v53 = vadd.f32 1.0, %v1338_v52 }
 0xebf   :  { %1339 = vrcp.f32 %v722_v53 }
 0xec9   :  { %v1340_v8 = vpop.eup %1339 }
 0xeca   :  { %v726_v56 = vmul.f32 %v1340_v8, %v633_v41 }
 0xf2d   :  { %v729_v54 = vpop.permute.xlu0 %728 }
 0xf2e   :  { %v731_v55 = vmul.f32 %v1340_v8, %v729_v54 }
 0xf30   :  { %733 = vrot.lane.b32.xlu1 %v731_v55, %s1414_s3 }
 0xfa2   :  { %v734_v11 = vpop.permute.xlu1 %733 }
 0xfa3   :  { %v736_v57 = vadd.f32 %v734_v11, %v726_v56 }
 0xfa5   :  { %1341 = vtanh.f32 %v736_v57 }
 0xfaf   :  { %v1342_v58 = vpop.eup %1341 }
 0xfb0   :  { %739 = vrot.lane.b32.xlu0 %v1342_v58, %s1413_s20 }
0x1022   :  { %v740_v59 = vpop.permute.xlu0 %739 }
0x1023   :  { %v742_v60 = vmul.f32 %v1340_v8, %v740_v59 }
0x1025   :  { %744 = vrot.lane.b32.xlu1 %v742_v60, %s1414_s3 }
0x1097   :  { %v745_v61 = vpop.permute.xlu1 %744 }
0x1098   :  { %747 = vst.msk [vmem:[#allocation3 + $0x5] sm:$0x1] %vm231_vm2, %v745_v61  ;;  %1205 = vmatmul.mubr.msk.f32.vlgmr.msra.gmra.mrb[6].mxu1 %vm128_vm3, %v745_v61 }
0x1099   :  { %1226 = vmatprep.mubr.msk.f32.mxu1 %vm1411_vm0, %v1412_v1  ;;  %1282 = vmatpush3.bf16.msra.mxu1 %v1281_v37 }
0x109a   :  { %1283 = vmatprep.subr.bf16.mxu1 %v1410_v0 }
0x109d   :  { %1285 = vmatpush3.bf16.msra.mxu1 %v1284_v39 }
0x116b   :  { %v817_v63 = vpop.f32.mrb[6].mxu1 }
0x116c   :  { %v821_v2 = vadd.f32 %v817_v63, %v748_v62  ;;  %v1206_v3 = vpop.f32.mrb[7].mxu1 }
0x116e   :  { %1343 = vtanh.f32 %v821_v2  ;;  %v1070_v5 = vmul.f32 -1.442695, %v821_v2 }
0x1170   :  { %1345 = vpow2.f32 %v1070_v5 }
0x1178   :  { %v1344_v4 = vpop.eup %1343 }
0x1179   :  { %831 = vrot.lane.b32.xlu0 %v1344_v4, %s1413_s20 }
0x117a   :  { %v1346_v6 = vpop.eup %1345 }
0x117b   :  { %v825_v7 = vadd.f32 1.0, %v1346_v6 }
0x117d   :  { %1347 = vrcp.f32 %v825_v7 }
0x1187   :  { %v1348_v9 = vpop.eup %1347 }
0x1188   :  { %v829_v13 = vmul.f32 %v1348_v9, %v736_v57 }
0x11eb   :  { %v832_v10 = vpop.permute.xlu0 %831 }
0x11ec   :  { %v834_v12 = vmul.f32 %v1348_v9, %v832_v10 }
0x11ee   :  { %836 = vrot.lane.b32.xlu1 %v834_v12, %s1414_s3 }
0x1260   :  { %v837_v1 = vpop.permute.xlu1 %836 }
0x1261   :  { %v839_v14 = vadd.f32 %v837_v1, %v829_v13 }
0x1263   :  { %1349 = vtanh.f32 %v839_v14 }
0x126d   :  { %v1350_v15 = vpop.eup %1349 }
0x126e   :  { %842 = vrot.lane.b32.xlu0 %v1350_v15, %s1413_s20 }
0x12e0   :  { %v843_v16 = vpop.permute.xlu0 %842 }
0x12e1   :  { %v845_v17 = vmul.f32 %v1348_v9, %v843_v16 }
0x12e3   :  { %847 = vrot.lane.b32.xlu1 %v845_v17, %s1414_s3 }
0x1355   :  { %v848_v18 = vpop.permute.xlu1 %847 }
0x1356   :  { %850 = vst.msk [vmem:[#allocation3 + $0x6] sm:$0x1] %vm231_vm2, %v848_v18  ;;  %1216 = vmatmul.mubr.msk.f32.vlgmr.msra.gmra.mrb[8].mxu0 %vm128_vm3, %v848_v18 }
0x1429   :  { %v920_v20 = vpop.f32.mrb[8].mxu0 }
0x142a   :  { %v924_v21 = vadd.f32 %v920_v20, %v851_v19  ;;  %v1217_v22 = vpop.f32.mrb[9].mxu0 }
0x142c   :  { %1351 = vtanh.f32 %v924_v21  ;;  %v1072_v24 = vmul.f32 -1.442695, %v924_v21 }
0x142e   :  { %1353 = vpow2.f32 %v1072_v24 }
0x1436   :  { %v1352_v23 = vpop.eup %1351 }
0x1437   :  { %934 = vrot.lane.b32.xlu0 %v1352_v23, %s1413_s20 }
0x1438   :  { %v1354_v25 = vpop.eup %1353 }
0x1439   :  { %v928_v26 = vadd.f32 1.0, %v1354_v25 }
0x143b   :  { %1355 = vrcp.f32 %v928_v26 }
0x1445   :  { %v1356_v27 = vpop.eup %1355 }
0x1446   :  { %v932_v30 = vmul.f32 %v1356_v27, %v839_v14 }
0x14a9   :  { %v935_v28 = vpop.permute.xlu0 %934 }
0x14aa   :  { %v937_v29 = vmul.f32 %v1356_v27, %v935_v28 }
0x14ac   :  { %939 = vrot.lane.b32.xlu1 %v937_v29, %s1414_s3 }
0x151e   :  { %v940_v31 = vpop.permute.xlu1 %939 }
0x151f   :  { %v942_v32 = vadd.f32 %v940_v31, %v932_v30 }
0x1521   :  { %1357 = vtanh.f32 %v942_v32 }
0x152b   :  { %v1358_v33 = vpop.eup %1357 }
0x152c   :  { %945 = vrot.lane.b32.xlu0 %v1358_v33, %s1413_s20 }
0x159e   :  { %v946_v40 = vpop.permute.xlu0 %945 }
0x159f   :  { %v948_v41 = vmul.f32 %v1356_v27, %v946_v40 }
0x15a1   :  { %950 = vrot.lane.b32.xlu1 %v948_v41, %s1414_s3 }
0x1613   :  { %v951_v42 = vpop.permute.xlu1 %950 }
0x1614   :  { %953 = vst.msk [vmem:[#allocation3 + $0x7] sm:$0x1] %vm231_vm2, %v951_v42 }
0x161b   :  { %v954_v43 = vld [vmem:[#allocation3] sm:$0xff] }
0x161c   :  { %1227 = vmatmul.mubr.msk.f32.vlgmr.msra.gmra.mrb[8].mxu1 %vm128_vm3, %v954_v43 }
0x16ef   :  { %v1035_v45 = vpop.f32.mrb[8].mxu1 }
0x16f0   :  { %v1036_v0 = vadd.f32 %v1073_v44, %v1035_v45  ;;  %v1228_v46 = vpop.f32.mrb[9].mxu1 }
0x16f2   :  { %1040 = vst.msk [vmem:[#allocation7] sm:$0xff] %vm1039_vm4, %v1036_v0 }
0x16f3   :  { %1392 = shalt.err (!%p1389_p12)
}
0x16f4   :  { %s1393_s11 = scalar_lea.hbm %s1622_s6, 128 }
0x16f5   :  { %p1394_p13 = scmp.ne.s32.totalorder %s1622_s6, %s1393_s11  ;;  %p1397_p0 = scmp.lt.u32.totalorder %s1393_s11, %s1622_s6 }
0x16f7   :  { %p1399_p1 = pnand %p1397_p0, %p1394_p13 }
0x16f9   :  { %1402 = shalt.err (!%p1399_p1)
}
0x16fa   :  { %1050 = dma.vmem_to_hbm [thread:$0]  %s1048_s7, 128, %s1622_s6, [#allocation6]  }
0x16fb   :  { %1405 = dma.done.wait [#allocation6], 128  }
0x16fc   :  { %1406 = vsyncadd [#allocation6], 4294967168 }
0x16fd   :  { %1054 = vsyncpa [#allocation5], 1 }
0x16fe   :  { %1055 = vsyncpa [#allocation6], 1 }

</bundles_post_ra>
